<compile_context>
chip_gen: v7x
topology: tpu7x:2x2x1
jax: 0.10.0
libtpu: 0.0.40
codegen_flags: <defaults>
</compile_context>

<pallas_src>
import functools

import jax
import jax.numpy as jnp
from jax.experimental import pallas as pl
from jax.experimental.pallas import tpu as pltpu


def _round_up(x, m):
    return ((x + m - 1) // m) * m


def contrastive_kernel(patches_ref, wc_ref, bc_ref, w1_ref, b1_ref,
                       w2_ref, b2_ref, out_ref, acc_ref,
                       *, hw, tile_rows, mask_tail):
    c = pl.program_id(1)
    n_c = pl.num_programs(1)

    # Backbone conv (im2col chunk) on the MXU; bias + ReLU on the VPU.
    h = jnp.dot(patches_ref[0], wc_ref[...], preferred_element_type=jnp.float32)
    h = jnp.maximum(h + bc_ref[...], 0.0)                    # (tile_rows, Dbb_pad)

    if mask_tail:
        # Zero-pad tail rows produce relu(bias) != 0 -> mask them out of the pool sum.
        row = c * tile_rows + jax.lax.broadcasted_iota(jnp.int32, h.shape, 0)
        h = jnp.where(row < hw, h, 0.0)

    # Partial spatial sum for the global average pool (XLU reduce, off the MXU path).
    psum = jnp.sum(h, axis=0, keepdims=True)                 # (1, Dbb_pad)

    @pl.when(c == 0)
    def _():
        acc_ref[...] = jnp.zeros_like(acc_ref)

    acc_ref[...] += psum

    @pl.when(c == n_c - 1)
    def _():
        pooled = acc_ref[...] * (1.0 / hw)                   # (1, Dbb_pad)
        # Contrastive head: Linear -> ReLU -> Linear.
        f = jnp.dot(pooled, w1_ref[...], preferred_element_type=jnp.float32) + b1_ref[...]
        f = jnp.maximum(f, 0.0)
        f = jnp.dot(f, w2_ref[...], preferred_element_type=jnp.float32) + b2_ref[...]
        # F.normalize(dim=1): x / max(||x||, 1e-12) == x * rsqrt(max(sumsq, 1e-24)).
        sumsq = jnp.sum(f * f, axis=1, keepdims=True)
        inv = jax.lax.rsqrt(jnp.maximum(sumsq, 1e-24))       # EUP, not a VPU divide
        out_ref[0] = (f * inv).astype(out_ref.dtype)


def contrastive_forward(x_nchw, params, *, tile_rows_target=1024):
    """x_nchw: (B, C, H, W) float32 -> L2-normalized features (B, features_dim)."""
    wc, bc, w1, b1, w2, b2 = params
    B, C, H, W = x_nchw.shape
    K = 9 * C
    Dbb = wc.shape[1]
    Dfeat = w2.shape[1]
    HW = H * W

    # ---- lane-dense padding of feature dims to multiples of 128 (zeros are inert) ----
    Dbb_p = _round_up(Dbb, 128)
    Dft_p = _round_up(Dfeat, 128)
    wc_p = jnp.zeros((K, Dbb_p), jnp.float32).at[:, :Dbb].set(wc)
    bc_p = jnp.zeros((1, Dbb_p), jnp.float32).at[:, :Dbb].set(bc)
    w1_p = jnp.zeros((Dbb_p, Dbb_p), jnp.float32).at[:Dbb, :Dbb].set(w1)
    b1_p = jnp.zeros((1, Dbb_p), jnp.float32).at[:, :Dbb].set(b1)
    w2_p = jnp.zeros((Dbb_p, Dft_p), jnp.float32).at[:Dbb, :Dfeat].set(w2)
    b2_p = jnp.zeros((1, Dft_p), jnp.float32).at[:, :Dfeat].set(b2)

    # ---- im2col (pure layout): (B, HW, 9*C), patch index = (dy*3 + dx)*C + c ----
    x = jnp.transpose(x_nchw, (0, 2, 3, 1)).astype(jnp.float32)      # NHWC
    xp = jnp.pad(x, ((0, 0), (1, 1), (1, 1), (0, 0)))                # conv pad = 1
    patches = jnp.concatenate(
        [xp[:, dy:dy + H, dx:dx + W, :] for dy in range(3) for dx in range(3)],
        axis=-1).reshape(B, HW, K)
    # TODO(synk): on v5e the 9x im2col stream dominates HBM traffic; a 9-shifted
    # accumulating-matmul conv inside the kernel would cut input bytes ~9x.

    # ---- spatial tiling: tile_rows multiple of 8, pad HW up to a tile multiple ----
    tile_rows = max(8, (min(tile_rows_target, HW) // 8) * 8)
    n_chunks = pl.cdiv(HW, tile_rows)
    HW_pad = n_chunks * tile_rows
    mask_tail = HW_pad != HW
    if mask_tail:
        patches = jnp.pad(patches, ((0, 0), (0, HW_pad - HW), (0, 0)))

    kernel = functools.partial(contrastive_kernel, hw=HW,
                               tile_rows=tile_rows, mask_tail=mask_tail)

    # Explicit VMEM budget (double-buffered patch tiles + weights + h chunk + acc),
    # kept well under v7x's 64 MiB physical VMEM.
    est = 4 * (2 * tile_rows * K
               + 2 * (K * Dbb_p + Dbb_p * Dbb_p + Dbb_p * Dft_p + 3 * Dbb_p + Dft_p)
               + tile_rows * Dbb_p + Dbb_p + 2 * Dft_p)
    vmem_limit = int(min(48 * 1024 * 1024, est + (4 << 20)))

    out = pl.pallas_call(
        kernel,
        out_shape=jax.ShapeDtypeStruct((B, 1, Dft_p), jnp.float32),
        grid=(B, n_chunks),
        in_specs=[
            pl.BlockSpec((1, tile_rows, K), lambda b, c: (b, c, 0)),   # patch stream
            pl.BlockSpec((K, Dbb_p), lambda b, c: (0, 0)),             # conv weight
            pl.BlockSpec((1, Dbb_p), lambda b, c: (0, 0)),             # conv bias
            pl.BlockSpec((Dbb_p, Dbb_p), lambda b, c: (0, 0)),         # head w1
            pl.BlockSpec((1, Dbb_p), lambda b, c: (0, 0)),             # head b1
            pl.BlockSpec((Dbb_p, Dft_p), lambda b, c: (0, 0)),         # head w2
            pl.BlockSpec((1, Dft_p), lambda b, c: (0, 0)),             # head b2
        ],
        out_specs=pl.BlockSpec((1, 1, Dft_p), lambda b, c: (b, 0, 0)),
        scratch_shapes=[pltpu.VMEM((1, Dbb_p), jnp.float32)],          # pool accumulator
        compiler_params=pltpu.CompilerParams(
            dimension_semantics=("parallel", "arbitrary"),
            vmem_limit_bytes=vmem_limit),
    )(patches, wc_p, bc_p, w1_p, b1_p, w2_p, b2_p)

    return out.reshape(B, Dft_p)[:, :Dfeat]


def init_params(key, c_in, backbone_dim, features_dim):
    """Deterministic synthetic parameter init (shapes follow the PyTorch module)."""
    k = jax.random.split(key, 6)
    scale = 0.05
    wc = scale * jax.random.normal(k[0], (9 * c_in, backbone_dim), jnp.float32)  # 3x3 conv (im2col)
    bc = scale * jax.random.normal(k[1], (1, backbone_dim), jnp.float32)
    w1 = scale * jax.random.normal(k[2], (backbone_dim, backbone_dim), jnp.float32)
    b1 = scale * jax.random.normal(k[3], (1, backbone_dim), jnp.float32)
    w2 = scale * jax.random.normal(k[4], (backbone_dim, features_dim), jnp.float32)
    b2 = scale * jax.random.normal(k[5], (1, features_dim), jnp.float32)
    return (wc, bc, w1, b1, w2, b2)


def reference_forward(x_nchw, params):
    """Pure-JAX reference of the same synthetic backbone + mlp head + F.normalize."""
    wc, bc, w1, b1, w2, b2 = params
    B, C, H, W = x_nchw.shape
    x = jnp.transpose(x_nchw, (0, 2, 3, 1)).astype(jnp.float32)
    xp = jnp.pad(x, ((0, 0), (1, 1), (1, 1), (0, 0)))
    patches = jnp.concatenate(
        [xp[:, dy:dy + H, dx:dx + W, :] for dy in range(3) for dx in range(3)],
        axis=-1).reshape(B, H * W, 9 * C)
    h = jnp.maximum(jnp.einsum('bpk,kd->bpd', patches, wc) + bc, 0.0)
    pooled = jnp.mean(h, axis=1)
    f = jnp.maximum(pooled @ w1 + b1, 0.0)
    f = f @ w2 + b2
    n = jnp.sqrt(jnp.sum(f * f, axis=1, keepdims=True))
    return f / jnp.maximum(n, 1e-12)


if __name__ == "__main__":
    B, C, H, W = 2, 4, 16, 16
    backbone_dim, features_dim = 32, 128

    key = jax.random.PRNGKey(0)
    kx, kp = jax.random.split(key)
    x = jax.random.normal(kx, (B, C, H, W), jnp.float32)
    params = init_params(kp, C, backbone_dim, features_dim)

    feats = jax.block_until_ready(contrastive_forward(x, params))
    ref = reference_forward(x, params)

    assert feats.shape == (B, features_dim)
    norms = jnp.linalg.norm(feats, axis=1)
    assert bool(jnp.all(jnp.isfinite(feats)))
    assert bool(jnp.all(jnp.abs(norms - 1.0) < 1e-4))
    assert bool(jnp.max(jnp.abs(feats - ref)) < 2e-2)
    print("KERNEL_OK")
</pallas_src>

<mosaic_0001>
module attributes {stable_mosaic.version = 11 : i64} {
  func.func @contrastive_kernel(%arg0: i32, %arg1: i32, %arg2: memref<1x256x36xf32, #tpu.memory_space<vmem>>, %arg3: memref<36x128xf32, #tpu.memory_space<vmem>>, %arg4: memref<1x128xf32, #tpu.memory_space<vmem>>, %arg5: memref<128x128xf32, #tpu.memory_space<vmem>>, %arg6: memref<1x128xf32, #tpu.memory_space<vmem>>, %arg7: memref<128x128xf32, #tpu.memory_space<vmem>>, %arg8: memref<1x128xf32, #tpu.memory_space<vmem>>, %arg9: memref<1x1x128xf32, #tpu.memory_space<vmem>>, %arg10: memref<1x128xf32, #tpu.memory_space<vmem>>) attributes {dimension_semantics = [#tpu.dimension_semantics<parallel>, #tpu.dimension_semantics<arbitrary>], iteration_bounds = array<i64: 2, 1>, scalar_prefetch = 0 : i64, scratch_operands = 1 : i64, tpu.core_type = #tpu.core_type<tc>, window_params = [{transform_indices = @transform_0, window_bounds = array<i64: 1, 256, 36>}, {pipeline_mode = #tpu.pipeline_mode<synchronous>, transform_indices = @transform_1, window_bounds = array<i64: 36, 128>}, {pipeline_mode = #tpu.pipeline_mode<synchronous>, transform_indices = @transform_2, window_bounds = array<i64: 1, 128>}, {pipeline_mode = #tpu.pipeline_mode<synchronous>, transform_indices = @transform_3, window_bounds = array<i64: 128, 128>}, {pipeline_mode = #tpu.pipeline_mode<synchronous>, transform_indices = @transform_4, window_bounds = array<i64: 1, 128>}, {pipeline_mode = #tpu.pipeline_mode<synchronous>, transform_indices = @transform_5, window_bounds = array<i64: 128, 128>}, {pipeline_mode = #tpu.pipeline_mode<synchronous>, transform_indices = @transform_6, window_bounds = array<i64: 1, 128>}, {transform_indices = @transform_7, window_bounds = array<i64: 1, 1, 128>}]} {
    %c0 = arith.constant 0 : index
    %c0_0 = arith.constant 0 : index
    %c0_1 = arith.constant 0 : index
    %0 = vector.load %arg2[%c0, %c0_0, %c0_1] : memref<1x256x36xf32, #tpu.memory_space<vmem>>, vector<1x256x36xf32>
    %1 = vector.shape_cast %0 : vector<1x256x36xf32> to vector<256x36xf32>
    %c0_2 = arith.constant 0 : index
    %c0_3 = arith.constant 0 : index
    %2 = vector.load %arg3[%c0_2, %c0_3] : memref<36x128xf32, #tpu.memory_space<vmem>>, vector<36x128xf32>
    %cst = arith.constant dense<0.000000e+00> : vector<256x128xf32>
    %3 = tpu.matmul %1, %2, %cst {dimension_numbers = #tpu.dot_dimension_numbers<[1], [0], [0], [1], [0, 0, 1, 1], [], []>} : vector<256x36xf32>, vector<36x128xf32>, vector<256x128xf32> -> vector<256x128xf32>
    %c0_4 = arith.constant 0 : index
    %c0_5 = arith.constant 0 : index
    %4 = vector.load %arg4[%c0_4, %c0_5] : memref<1x128xf32, #tpu.memory_space<vmem>>, vector<1x128xf32>
    %5 = vector.broadcast %4 : vector<1x128xf32> to vector<256x128xf32>
    %6 = arith.addf %3, %5 : vector<256x128xf32>
    %cst_6 = arith.constant 0.000000e+00 : f32
    %7 = vector.broadcast %cst_6 : f32 to vector<256x128xf32>
    %8 = arith.maximumf %6, %7 : vector<256x128xf32>
    %cst_7 = arith.constant dense<0.000000e+00> : vector<128xf32>
    %9 = vector.multi_reduction <add>, %8, %cst_7 [0] : vector<256x128xf32> to vector<128xf32>
    %10 = vector.shape_cast %9 : vector<128xf32> to vector<1x128xf32>
    %c0_i32 = arith.constant 0 : i32
    %11 = arith.cmpi eq, %arg1, %c0_i32 : i32
    %12 = arith.extui %11 : i1 to i32
    %c0_i32_8 = arith.constant 0 : i32
    %13 = arith.cmpi ne, %12, %c0_i32_8 : i32
    scf.if %13 {
      %cst_15 = arith.constant 0.000000e+00 : f32
      %20 = vector.broadcast %cst_15 : f32 to vector<1x128xf32>
      %c0_16 = arith.constant 0 : index
      %c0_17 = arith.constant 0 : index
      %21 = vector.load %arg10[%c0_16, %c0_17] : memref<1x128xf32, #tpu.memory_space<vmem>>, vector<1x128xf32>
      tpu.vector_store %arg10[%c0_16, %c0_17], %20 {strides = array<i32>} : memref<1x128xf32, #tpu.memory_space<vmem>>, vector<1x128xf32>,
    } else {
    }
    %c0_9 = arith.constant 0 : index
    %c0_10 = arith.constant 0 : index
    %14 = vector.load %arg10[%c0_9, %c0_10] : memref<1x128xf32, #tpu.memory_space<vmem>>, vector<1x128xf32>
    %15 = arith.addf %14, %10 : vector<1x128xf32>
    %c0_11 = arith.constant 0 : index
    %c0_12 = arith.constant 0 : index
    %16 = vector.load %arg10[%c0_11, %c0_12] : memref<1x128xf32, #tpu.memory_space<vmem>>, vector<1x128xf32>
    tpu.vector_store %arg10[%c0_11, %c0_12], %15 {strides = array<i32>} : memref<1x128xf32, #tpu.memory_space<vmem>>, vector<1x128xf32>,
    %c0_i32_13 = arith.constant 0 : i32
    %17 = arith.cmpi eq, %arg1, %c0_i32_13 : i32
    %18 = arith.extui %17 : i1 to i32
    %c0_i32_14 = arith.constant 0 : i32
    %19 = arith.cmpi ne, %18, %c0_i32_14 : i32
    scf.if %19 {
      %c0_15 = arith.constant 0 : index
      %c0_16 = arith.constant 0 : index
      %20 = vector.load %arg10[%c0_15, %c0_16] : memref<1x128xf32, #tpu.memory_space<vmem>>, vector<1x128xf32>
      %cst_17 = arith.constant 3.906250e-03 : f32
      %21 = vector.broadcast %cst_17 : f32 to vector<1x128xf32>
      %22 = arith.mulf %20, %21 : vector<1x128xf32>
      %c0_18 = arith.constant 0 : index
      %c0_19 = arith.constant 0 : index
      %23 = vector.load %arg5[%c0_18, %c0_19] : memref<128x128xf32, #tpu.memory_space<vmem>>, vector<128x128xf32>
      %cst_20 = arith.constant dense<0.000000e+00> : vector<1x128xf32>
      %24 = tpu.matmul %22, %23, %cst_20 {dimension_numbers = #tpu.dot_dimension_numbers<[1], [0], [0], [1], [0, 0, 1, 1], [], []>} : vector<1x128xf32>, vector<128x128xf32>, vector<1x128xf32> -> vector<1x128xf32>
      %c0_21 = arith.constant 0 : index
      %c0_22 = arith.constant 0 : index
      %25 = vector.load %arg6[%c0_21, %c0_22] : memref<1x128xf32, #tpu.memory_space<vmem>>, vector<1x128xf32>
      %26 = arith.addf %24, %25 : vector<1x128xf32>
      %cst_23 = arith.constant 0.000000e+00 : f32
      %27 = vector.broadcast %cst_23 : f32 to vector<1x128xf32>
      %28 = arith.maximumf %26, %27 : vector<1x128xf32>
      %c0_24 = arith.constant 0 : index
      %c0_25 = arith.constant 0 : index
      %29 = vector.load %arg7[%c0_24, %c0_25] : memref<128x128xf32, #tpu.memory_space<vmem>>, vector<128x128xf32>
      %cst_26 = arith.constant dense<0.000000e+00> : vector<1x128xf32>
      %30 = tpu.matmul %28, %29, %cst_26 {dimension_numbers = #tpu.dot_dimension_numbers<[1], [0], [0], [1], [0, 0, 1, 1], [], []>} : vector<1x128xf32>, vector<128x128xf32>, vector<1x128xf32> -> vector<1x128xf32>
      %c0_27 = arith.constant 0 : index
      %c0_28 = arith.constant 0 : index
      %31 = vector.load %arg8[%c0_27, %c0_28] : memref<1x128xf32, #tpu.memory_space<vmem>>, vector<1x128xf32>
      %32 = arith.addf %30, %31 : vector<1x128xf32>
      %33 = arith.mulf %32, %32 : vector<1x128xf32>
      %cst_29 = arith.constant dense<0.000000e+00> : vector<1xf32>
      %34 = vector.multi_reduction <add>, %33, %cst_29 [1] : vector<1x128xf32> to vector<1xf32>
      %35 = vector.shape_cast %34 : vector<1xf32> to vector<1x1xf32>
      %cst_30 = arith.constant 1.000000e-24 : f32
      %36 = vector.broadcast %cst_30 : f32 to vector<1x1xf32>
      %37 = arith.maximumf %35, %36 : vector<1x1xf32>
      %38 = math.rsqrt %37 : vector<1x1xf32>
      %39 = vector.broadcast %38 : vector<1x1xf32> to vector<1x128xf32>
      %40 = arith.mulf %32, %39 : vector<1x128xf32>
      %c0_31 = arith.constant 0 : index
      %c0_32 = arith.constant 0 : index
      %c0_33 = arith.constant 0 : index
      %41 = vector.load %arg9[%c0_31, %c0_32, %c0_33] : memref<1x1x128xf32, #tpu.memory_space<vmem>>, vector<1x1x128xf32>
      %42 = vector.shape_cast %41 : vector<1x1x128xf32> to vector<1x128xf32>
      %43 = vector.shape_cast %40 : vector<1x128xf32> to vector<1x1x128xf32>
      tpu.vector_store %arg9[%c0_31, %c0_32, %c0_33], %43 {strides = array<i32>} : memref<1x1x128xf32, #tpu.memory_space<vmem>>, vector<1x1x128xf32>,
    } else {
    }
    return
  }
  func.func @transform_0(%arg0: i32, %arg1: i32) -> (i32, i32, i32) {
    %c0_i32 = arith.constant 0 : i32
    %c0_i32_0 = arith.constant 0 : i32
    return %arg0, %arg1, %c0_i32 : i32, i32, i32
  }
  func.func @transform_1(%arg0: i32, %arg1: i32) -> (i32, i32) {
    %c0_i32 = arith.constant 0 : i32
    %c0_i32_0 = arith.constant 0 : i32
    %c0_i32_1 = arith.constant 0 : i32
    return %c0_i32, %c0_i32_0 : i32, i32
  }
  func.func @transform_2(%arg0: i32, %arg1: i32) -> (i32, i32) {
    %c0_i32 = arith.constant 0 : i32
    %c0_i32_0 = arith.constant 0 : i32
    %c0_i32_1 = arith.constant 0 : i32
    return %c0_i32, %c0_i32_0 : i32, i32
  }
  func.func @transform_3(%arg0: i32, %arg1: i32) -> (i32, i32) {
    %c0_i32 = arith.constant 0 : i32
    %c0_i32_0 = arith.constant 0 : i32
    %c0_i32_1 = arith.constant 0 : i32
    return %c0_i32, %c0_i32_0 : i32, i32
  }
  func.func @transform_4(%arg0: i32, %arg1: i32) -> (i32, i32) {
    %c0_i32 = arith.constant 0 : i32
    %c0_i32_0 = arith.constant 0 : i32
    %c0_i32_1 = arith.constant 0 : i32
    return %c0_i32, %c0_i32_0 : i32, i32
  }
  func.func @transform_5(%arg0: i32, %arg1: i32) -> (i32, i32) {
    %c0_i32 = arith.constant 0 : i32
    %c0_i32_0 = arith.constant 0 : i32
    %c0_i32_1 = arith.constant 0 : i32
    return %c0_i32, %c0_i32_0 : i32, i32
  }
  func.func @transform_6(%arg0: i32, %arg1: i32) -> (i32, i32) {
    %c0_i32 = arith.constant 0 : i32
    %c0_i32_0 = arith.constant 0 : i32
    %c0_i32_1 = arith.constant 0 : i32
    return %c0_i32, %c0_i32_0 : i32, i32
  }
  func.func @transform_7(%arg0: i32, %arg1: i32) -> (i32, i32, i32) {
    %c0_i32 = arith.constant 0 : i32
    %c0_i32_0 = arith.constant 0 : i32
    %c0_i32_1 = arith.constant 0 : i32
    return %arg0, %c0_i32, %c0_i32_0 : i32, i32, i32
  }
}

</mosaic_0001>

<bundles_post_ra>
// kernel: tpu_custom_call.1
= control target key start
LH: loop header
LB: loop body
LE: loop exit
PB: predicated region body
PF: predicated region fallthrough
CT: control target
= control target key end

     0   :  { %12 = vsyncpa [#allocation4], 0  ;;  %s1859_s0 = inlined_call_operand.vmem [shape: f32[2,256,36], index: 0, kind: input, shape index: {}]   ;;  %s1860_s1 = inlined_call_operand.vmem [shape: f32[36,128], index: 1, kind: input, shape index: {}]   ;;  %s1861_s2 = inlined_call_operand.vmem [shape: f32[1,128], index: 2, kind: input, shape index: {}]   ;;  %s1862_s3 = inlined_call_operand.vmem [shape: f32[128,128], index: 3, kind: input, shape index: {}]   ;;  %s1863_s4 = inlined_call_operand.vmem [shape: f32[1,128], index: 4, kind: input, shape index: {}]   ;;  %s1864_s5 = inlined_call_operand.vmem [shape: f32[128,128], index: 5, kind: input, shape index: {}]   ;;  %s1865_s6 = inlined_call_operand.vmem [shape: f32[1,128], index: 6, kind: input, shape index: {}]   ;;  %s1866_s7 = inlined_call_operand.hbm [shape: f32[2,1,128], index: 7, kind: output, shape index: {}]  }
   0x1   :  { %14 = vsyncpa [#allocation4 + $0x1], 0  ;;  %s1506_s24 = smov 0   ;;  %s1508_s25 = smov 0  }
   0x2   :  { %s1510_s26 = smov 0   ;;  %s1512_s27 = smov 0  }
   0x3   :  { %s1514_s28 = smov 0   ;;  %s1516_s29 = smov 0  }
   0x4 LB: > { %s1022_s30 = sadd.s32 4294967295, %s1460_s29   ;;  %s1023_s8 = sadd.s32 4294967294, %s1460_s29   ;;  %s1460_s29 = sphi %s1516_s29, %s20_s29   ;;  %s1456_s28 = sphi %s1514_s28, %s1873_s28   ;;  %s1452_s27 = sphi %s1512_s27, %s1872_s27   ;;  %s1448_s26 = sphi %s1510_s26, %s1871_s26   ;;  %s1444_s25 = sphi %s1508_s25, %s1870_s25   ;;  %s1440_s24 = sphi %s1506_s24, %s1869_s24  }
   0x5   : > { %s32_s9 = sadd.s32 1, %s1456_s28  ;;  %s193_s10 = sadd.s32 1, %s1448_s26 }
   0x6   : > { %p34_p0 = scmp.ge.s32.totalorder %s32_s9, 2  ;;  %p203_p1 = scmp.ne.s32.totalorder %s1448_s26, %s1444_s25 }
   0x7   : > { %p204_p2 = scmp.eq.s32.totalorder %s1022_s30, 1  ;;  %p209_p3 = scmp.ne.s32.totalorder %s1444_s25, %s1440_s24 }
   0x8   : > { %s1875_s9 = smov (%p34_p0, %s32_s9), 0  ;;  %p210_p5 = scmp.eq.s32.totalorder %s1023_s8, 1 }
   0x9   : > { %p1546_p4 = por %p204_p2, %p203_p1  ;;  %s190_s12 = ssub.s32 %s1456_s28, %s1875_s9 }
   0xa   : > { %p1026_p6 = scmp.ge.s32.totalorder %s1460_s29, 1  ;;  %p191_p7 = scmp.eq.s32.totalorder %s190_s12, 0 }
   0xb   : > { %p1553_p8 = por %p210_p5, %p209_p3  ;;  %p259_p9 = scmp.lt.s32.totalorder %s1460_s29, 3 }
   0xc   : > { %s1559_s14 = scalar_select %p191_p7, %s1448_s26, %s193_s10  }
   0xd   : > { %p260_p10 = pnand %p1026_p6, %p259_p9 }
   0xe   : > { %v336_v0 = vld [vmem:[%s1860_s1] sm:$0xff] (!%p260_p10)  ;;  %v337_v1 = vld [vmem:[%s1860_s1 + $0x8] sm:$0xff] (!%p260_p10)  ;;  %v338_v2 = vld [vmem:[%s1860_s1 + $0x10] sm:$0xff] (!%p260_p10)  ;;  %p295_p11 = scmp.lt.s32.totalorder (!%p260_p10), %s1452_s27, 1  ;;  %vm348_vm0 = vcmask (!%p260_p10), 293888   ;;  %vm445_vm1 = vcmask (!%p260_p10), 1043456  }
   0xf   : > { %263 = sbr.rel (%p260_p10) target bundleno = 937 (0x3a9), region = 48  ;;  %v1266_v3 = vpack.c.bf16 (!%p260_p10), %v337_v1, %v336_v0  ;;  %v339_v4 = vld [vmem:[%s1860_s1 + $0x18] sm:$0xff] (!%p260_p10)  ;;  %v340_v6 = vld [vmem:[%s1860_s1 + $0x20] sm:$0xf] (!%p260_p10)  ;;  %v757_v40 = vld [vmem:[%s1862_s3 + $0x8] sm:$0xff] (!%p260_p10)  ;;  %v1462_v42 = vmov (!%p260_p10), 0.0|0.0  }
  0x10   : > { %v1270_v5 = vpack.c.bf16 (!%p260_p10), %v339_v4, %v338_v2  ;;  %v756_v39 = vld [vmem:[%s1862_s3] sm:$0xff] (!%p260_p10)  ;;  %1274 = vmatprep.subr.bf16.mxu1 (!%p260_p10), %v1462_v42  ;;  %v758_v43 = vld [vmem:[%s1862_s3 + $0x10] sm:$0xff] (!%p260_p10)  ;;  %v759_v44 = vld [vmem:[%s1862_s3 + $0x18] sm:$0xff] (!%p260_p10)  ;;  %v1463_v52 = vmov (!%p260_p10), 0.0   ;;  %vm1464_vm2 = vmmov (!%p260_p10), 0   ;;  %vm932_vm3 = vcmask (!%p260_p10), 1040384  }
  0x11   : > { %1267 = vmatprep.subr.bf16.mxu0 (!%p260_p10), %v1266_v3  ;;  %v1275_v41 = vpack.c.bf16 (!%p260_p10), %v757_v40, %v756_v39  ;;  %v1278_v45 = vpack.c.bf16 (!%p260_p10), %v759_v44, %v758_v43  ;;  %v760_v46 = vld [vmem:[%s1862_s3 + $0x20] sm:$0xff] (!%p260_p10)  ;;  %v761_v47 = vld [vmem:[%s1862_s3 + $0x28] sm:$0xff] (!%p260_p10)  ;;  %v762_v49 = vld [vmem:[%s1862_s3 + $0x30] sm:$0xff] (!%p260_p10)  ;;  %747 = vst [vmem:[#allocation2] sm:$0x1] (!%p260_p10), %v1463_v52  ;;  %1228 = vmatprep.mubr.msk.f32.mxu1 (!%p260_p10), %vm1464_vm2, %v1463_v52  ;;  %s292_s22 = sand.u32 (!%p260_p10), 1, %s1444_s25  }
  0x12   : > { %1269 = vmatpush3.bf16.msra.mxu0 (!%p260_p10), %v1266_v3  ;;  %v1281_v48 = vpack.c.bf16 (!%p260_p10), %v761_v47, %v760_v46  ;;  %v763_v50 = vld [vmem:[%s1862_s3 + $0x38] sm:$0xff] (!%p260_p10)  ;;  %v764_v53 = vld [vmem:[%s1862_s3 + $0x40] sm:$0xff] (!%p260_p10)  ;;  %v765_v54 = vld [vmem:[%s1862_s3 + $0x48] sm:$0xff] (!%p260_p10)  ;;  %s941_s16 = scalar_lea.sflag (!%p260_p10), [#allocation4], %s292_s22 }
  0x13   : > { %1271 = vmatprep.subr.bf16.mxu0 (!%p260_p10), %v1270_v5  ;;  %1276 = vmatpush3.bf16.msra.mxu1 (!%p260_p10), %v1275_v41  ;;  %v1284_v51 = vpack.c.bf16 (!%p260_p10), %v763_v50, %v762_v49  ;;  %v1287_v55 = vpack.c.bf16 (!%p260_p10), %v765_v54, %v764_v53  ;;  %v766_v56 = vld [vmem:[%s1862_s3 + $0x50] sm:$0xff] (!%p260_p10)  ;;  %v767_v57 = vld [vmem:[%s1862_s3 + $0x58] sm:$0xff] (!%p260_p10)  ;;  %v768_v58 = vld [vmem:[%s1862_s3 + $0x60] sm:$0xff] (!%p260_p10) }
  0x14   : > { %1277 = vmatprep.subr.bf16.mxu1 (!%p260_p10), %v1462_v42  ;;  %v1290_v59 = vpack.c.bf16 (!%p260_p10), %v767_v57, %v766_v56  ;;  %v769_v60 = vld [vmem:[%s1862_s3 + $0x68] sm:$0xff] (!%p260_p10)  ;;  %v770_v62 = vld [vmem:[%s1862_s3 + $0x70] sm:$0xff] (!%p260_p10)  ;;  %v771_v63 = vld [vmem:[%s1862_s3 + $0x78] sm:$0xff] (!%p260_p10) }
  0x15   : > { %v1293_v61 = vpack.c.bf16 (!%p260_p10), %v769_v60, %v768_v58  ;;  %v1296_v0 = vpack.c.bf16 (!%p260_p10), %v771_v63, %v770_v62  ;;  %v1710_v1 = vld [vmem:[%s1861_s2] ss:$0 sm:$0xff] (!%p260_p10) }
  0x16   : > { %s296_s23 = scalar_select %p295_p11, %s1452_s27, 1  ;;  %1273 = vmatpush3.bf16.msra.mxu0 %v1270_v5 }
  0x17   : > { %1146 = vmatprep.subr.msk.mxu0 %vm445_vm1, %v340_v6  ;;  %1279 = vmatpush3.bf16.msra.mxu1 %v1278_v45 }
  0x18   : > { %s1066_s30 = sshll.u32 %s296_s23, 8  ;;  %1280 = vmatprep.subr.bf16.mxu1 %v1462_v42  ;;  %s1063_s23 = sshll.u32 %s1452_s27, 4 }
  0x19   : > { %s1578_s12 = scalar_lea.vmem %s1859_s0, %s1066_s30  ;;  %s293_s30 = scalar_lea.vmem [#allocation3], %s292_s22 }
  0x1a   : > { %v304_v7 = vld [vmem:[%s1578_s12] sm:$0xff]  ;;  %v305_v8 = vld [vmem:[%s1578_s12 + $0x8] sm:$0xff]  ;;  %v306_v9 = vld [vmem:[%s1578_s12 + $0x10] sm:$0xff]  ;;  %1147 = vmatpush3.msk.msra.mxu0 %vm445_vm1, %v340_v6  ;;  %s953_s8 = sshll.u32 %s293_s30, 4  ;;  %s1812_s15 = scalar_lea.hbm %s1866_s7, %s1063_s23  ;;  %s1814_s8 = int_to_ptr.vmem [resolvable:$true] %s953_s8 }
  0x1b   : > { %1148 = vmatprep.mubr.msk.f32.mxu0 %vm348_vm0, %v304_v7  ;;  %v307_v10 = vld [vmem:[%s1578_s12 + $0x18] sm:$0xff]  ;;  %v308_v11 = vld [vmem:[%s1578_s12 + $0x20] sm:$0xff]  ;;  %v309_v12 = vld [vmem:[%s1578_s12 + $0x28] sm:$0xff]  ;;  %1282 = vmatpush3.bf16.msra.mxu1 %v1281_v48  ;;  %s1382_s17 = scalar_lea.vmem %s1814_s8, 16  ;;  %s1465_s27 = smov [#allocation3]  }
  0x1c   : > { %1149 = vmatmul.mubr.msk.f32.vlgmr.msra.gmra.mrb[0].mxu0 %vm348_vm0, %v305_v8  ;;  %v310_v13 = vld [vmem:[%s1578_s12 + $0x30] sm:$0xff]  ;;  %v311_v14 = vld [vmem:[%s1578_s12 + $0x38] sm:$0xff]  ;;  %v312_v15 = vld [vmem:[%s1578_s12 + $0x40] sm:$0xff]  ;;  %1283 = vmatprep.subr.bf16.mxu1 %v1462_v42  ;;  %p1383_p12 = scmp.ne.s32.totalorder %s1814_s8, %s1382_s17  ;;  %s1386_s18 = sshll.u32 %s1465_s27, 4  ;;  %s1387_s18 = int_to_ptr.vmem [resolvable:$false] %s1386_s18 }
  0x1d   : > { %1151 = vmatprep.mubr.msk.f32.mxu0 %vm348_vm0, %v306_v9  ;;  %v313_v16 = vld [vmem:[%s1578_s12 + $0x48] sm:$0xff]  ;;  %v314_v17 = vld [vmem:[%s1578_s12 + $0x50] sm:$0xff]  ;;  %v315_v18 = vld [vmem:[%s1578_s12 + $0x58] sm:$0xff]  ;;  %s1388_s19 = scalar_lea.vmem %s1387_s18, 32  ;;  %p1389_p1 = scmp.lt.s32.totalorder %s1814_s8, %s1387_s18 }
  0x1e   : > { %v316_v19 = vld [vmem:[%s1578_s12 + $0x60] sm:$0xff]  ;;  %v317_v20 = vld [vmem:[%s1578_s12 + $0x68] sm:$0xff]  ;;  %v318_v21 = vld [vmem:[%s1578_s12 + $0x70] sm:$0xff]  ;;  %p1384_p13 = pnand %p1383_p12, %p1546_p4  ;;  %p1390_p2 = scmp.lt.s32.totalorder %s1388_s19, %s1382_s17 }
  0x1f   : > { %v319_v22 = vld [vmem:[%s1578_s12 + $0x78] sm:$0xff]  ;;  %v320_v23 = vld [vmem:[%s1578_s12 + $0x80] sm:$0xff]  ;;  %v321_v24 = vld [vmem:[%s1578_s12 + $0x88] sm:$0xff]  ;;  %1285 = vmatpush3.bf16.msra.mxu1 %v1284_v51 }
  0x20   : > { %1152 = vmatmul.mubr.msk.f32.gmra.mrb[2].mxu0 %vm348_vm0, %v307_v10  ;;  %v322_v25 = vld [vmem:[%s1578_s12 + $0x90] sm:$0xff]  ;;  %v323_v26 = vld [vmem:[%s1578_s12 + $0x98] sm:$0xff]  ;;  %v324_v27 = vld [vmem:[%s1578_s12 + $0xa0] sm:$0xff]  ;;  %1286 = vmatprep.subr.bf16.mxu1 %v1462_v42  ;;  %p1385_p0 = pneg %p1384_p13  ;;  %p1391_p3 = por %p1390_p2, %p1389_p1 }
  0x21   : > { %1154 = vmatprep.mubr.msk.f32.mxu0 %vm348_vm0, %v308_v11  ;;  %v325_v28 = vld [vmem:[%s1578_s12 + $0xa8] sm:$0xff]  ;;  %v326_v29 = vld [vmem:[%s1578_s12 + $0xb0] sm:$0xff]  ;;  %v327_v30 = vld [vmem:[%s1578_s12 + $0xb8] sm:$0xff] }
  0x22   : > { %v328_v31 = vld [vmem:[%s1578_s12 + $0xc0] sm:$0xff]  ;;  %v329_v32 = vld [vmem:[%s1578_s12 + $0xc8] sm:$0xff]  ;;  %v330_v33 = vld [vmem:[%s1578_s12 + $0xd0] sm:$0xff]  ;;  %p1392_p5 = pnand %p1391_p3, %p1385_p0 }
  0x23   : > { %v331_v34 = vld [vmem:[%s1578_s12 + $0xd8] sm:$0xff]  ;;  %v332_v35 = vld [vmem:[%s1578_s12 + $0xe0] sm:$0xff]  ;;  %v333_v36 = vld [vmem:[%s1578_s12 + $0xe8] sm:$0xff]  ;;  %1288 = vmatpush3.bf16.msra.mxu1 %v1287_v55 }
  0x24   : > { %1155 = vmatmul.mubr.msk.f32.gmra.mrb[4].mxu0 %vm348_vm0, %v309_v12  ;;  %v334_v37 = vld [vmem:[%s1578_s12 + $0xf0] sm:$0xff]  ;;  %v335_v38 = vld [vmem:[%s1578_s12 + $0xf8] sm:$0xff]  ;;  %1289 = vmatprep.subr.bf16.mxu1 %v1462_v42 }
  0x25   : > { %1157 = vmatprep.mubr.msk.f32.mxu0 %vm348_vm0, %v310_v13 }
  0x27   : > { %1291 = vmatpush3.bf16.msra.mxu1 %v1290_v59 }
  0x28   : > { %1158 = vmatmul.mubr.msk.f32.gmra.mrb[6].mxu0 %vm348_vm0, %v311_v14  ;;  %1292 = vmatprep.subr.bf16.mxu1 %v1462_v42 }
  0x29   : > { %1160 = vmatprep.mubr.msk.f32.mxu0 %vm348_vm0, %v312_v15 }
  0x2b   : > { %1294 = vmatpush3.bf16.msra.mxu1 %v1293_v61 }
  0x2c   : > { %1161 = vmatmul.mubr.msk.f32.gmra.mrb[8].mxu0 %vm348_vm0, %v313_v16  ;;  %1295 = vmatprep.subr.bf16.mxu1 %v1462_v42 }
  0x2d   : > { %1163 = vmatprep.mubr.msk.f32.mxu0 %vm348_vm0, %v314_v17 }
  0x2f   : > { %1297 = vmatpush3.bf16.msra.mxu1 %v1296_v0 }
  0x30   : > { %1164 = vmatmul.mubr.msk.f32.gmra.mrb[10].mxu0 %vm348_vm0, %v315_v18  ;;  %1298 = vmatprep.subr.bf16.mxu1 %v1462_v42 }
  0x31   : > { %1166 = vmatprep.mubr.msk.f32.mxu0 %vm348_vm0, %v316_v19 }
  0x34   : > { %1167 = vmatmul.mubr.msk.f32.gmra.mrb[12].mxu0 %vm348_vm0, %v317_v20 }
  0x35   : > { %1169 = vmatprep.mubr.msk.f32.mxu0 %vm348_vm0, %v318_v21 }
  0x38   : > { %1170 = vmatmul.mubr.msk.f32.gmra.mrb[14].mxu0 %vm348_vm0, %v319_v22 }
  0x39   : > { %1172 = vmatprep.mubr.msk.f32.mxu0 %vm348_vm0, %v320_v23 }
  0x3c   : > { %1173 = vmatmul.mubr.msk.f32.gmra.mrb[16].mxu0 %vm348_vm0, %v321_v24 }
  0x3d   : > { %1175 = vmatprep.mubr.msk.f32.mxu0 %vm348_vm0, %v322_v25 }
  0x40   : > { %1176 = vmatmul.mubr.msk.f32.gmra.mrb[18].mxu0 %vm348_vm0, %v323_v26 }
  0x41   : > { %1178 = vmatprep.mubr.msk.f32.mxu0 %vm348_vm0, %v324_v27 }
  0x44   : > { %1179 = vmatmul.mubr.msk.f32.gmra.mrb[20].mxu0 %vm348_vm0, %v325_v28 }
  0x45   : > { %1181 = vmatprep.mubr.msk.f32.mxu0 %vm348_vm0, %v326_v29 }
  0x48   : > { %1182 = vmatmul.mubr.msk.f32.gmra.mrb[22].mxu0 %vm348_vm0, %v327_v30 }
  0x49   : > { %1184 = vmatprep.mubr.msk.f32.mxu0 %vm348_vm0, %v328_v31 }
  0x4c   : > { %1185 = vmatmul.mubr.msk.f32.gmra.mrb[24].mxu0 %vm348_vm0, %v329_v32 }
  0x4d   : > { %1187 = vmatprep.mubr.msk.f32.mxu0 %vm348_vm0, %v330_v33 }
  0x50   : > { %1188 = vmatmul.mubr.msk.f32.gmra.mrb[26].mxu0 %vm348_vm0, %v331_v34 }
  0x51   : > { %1190 = vmatprep.mubr.msk.f32.mxu0 %vm348_vm0, %v332_v35 }
  0x54   : > { %1191 = vmatmul.mubr.msk.f32.gmra.mrb[28].mxu0 %vm348_vm0, %v333_v36 }
  0x55   : > { %1193 = vmatprep.mubr.msk.f32.mxu0 %vm348_vm0, %v334_v37 }
  0x58   : > { %1194 = vmatmul.mubr.msk.f32.gmra.mrb[30].mxu0 %vm348_vm0, %v335_v38 }
  0xef   : > { %v1150_v2 = vpop.f32.mrb[0].mxu0 }
  0xf0   : > { %v521_v3 = vadd.f32 %v1150_v2, %v1710_v1  ;;  %v515_v4 = vpop.f32.mrb[1].mxu0 }
  0xf1   : > { %v516_v5 = vadd.f32 %v1710_v1, %v515_v4 }
  0xf2   : > { %v675_v6 = vmax.f32 %v521_v3, 0.0 }
  0xf3   : > { %v674_v7 = vmax.f32 %v516_v5, 0.0  ;;  %v1153_v8 = vpop.f32.mrb[2].mxu0 }
  0xf4   : > { %v525_v9 = vpop.f32.mrb[3].mxu0  ;;  %v531_v11 = vadd.f32 %v1153_v8, %v1710_v1 }
  0xf5   : > { %v706_v10 = vadd.f32 %v675_v6, %v674_v7  ;;  %v526_v12 = vadd.f32 %v1710_v1, %v525_v9 }
  0xf6   : > { %v677_v16 = vmax.f32 %v531_v11, 0.0 }
  0xf7   : > { %v676_v13 = vmax.f32 %v526_v12, 0.0  ;;  %v1156_v14 = vpop.f32.mrb[4].mxu0 }
  0xf8   : > { %v535_v15 = vpop.f32.mrb[5].mxu0  ;;  %v541_v18 = vadd.f32 %v1156_v14, %v1710_v1 }
  0xf9   : > { %v707_v17 = vadd.f32 %v706_v10, %v676_v13  ;;  %v536_v19 = vadd.f32 %v1710_v1, %v535_v15 }
  0xfa   : > { %v679_v24 = vmax.f32 %v541_v18, 0.0 }
  0xfb   : > { %v678_v20 = vmax.f32 %v536_v19, 0.0  ;;  %v708_v21 = vadd.f32 %v707_v17, %v677_v16  ;;  %v1159_v22 = vpop.f32.mrb[6].mxu0 }
  0xfc   : > { %v545_v23 = vpop.f32.mrb[7].mxu0  ;;  %v551_v26 = vadd.f32 %v1159_v22, %v1710_v1 }
  0xfd   : > { %v709_v25 = vadd.f32 %v708_v21, %v678_v20  ;;  %v546_v27 = vadd.f32 %v1710_v1, %v545_v23 }
  0xfe   : > { %v681_v32 = vmax.f32 %v551_v26, 0.0 }
  0xff   : > { %v680_v28 = vmax.f32 %v546_v27, 0.0  ;;  %v710_v29 = vadd.f32 %v709_v25, %v679_v24  ;;  %v1162_v30 = vpop.f32.mrb[8].mxu0 }
 0x100   : > { %v555_v31 = vpop.f32.mrb[9].mxu0  ;;  %v561_v34 = vadd.f32 %v1162_v30, %v1710_v1 }
 0x101   : > { %v711_v33 = vadd.f32 %v710_v29, %v680_v28  ;;  %v556_v35 = vadd.f32 %v1710_v1, %v555_v31 }
 0x102   : > { %v683_v40 = vmax.f32 %v561_v34, 0.0 }
 0x103   : > { %v682_v36 = vmax.f32 %v556_v35, 0.0  ;;  %v712_v37 = vadd.f32 %v711_v33, %v681_v32  ;;  %v1165_v38 = vpop.f32.mrb[10].mxu0 }
 0x104   : > { %v565_v39 = vpop.f32.mrb[11].mxu0  ;;  %v571_v43 = vadd.f32 %v1165_v38, %v1710_v1 }
 0x105   : > { %v713_v41 = vadd.f32 %v712_v37, %v682_v36  ;;  %v566_v44 = vadd.f32 %v1710_v1, %v565_v39 }
 0x106   : > { %v685_v49 = vmax.f32 %v571_v43, 0.0 }
 0x107   : > { %v684_v45 = vmax.f32 %v566_v44, 0.0  ;;  %v714_v46 = vadd.f32 %v713_v41, %v683_v40  ;;  %v1168_v47 = vpop.f32.mrb[12].mxu0 }
 0x108   : > { %v575_v48 = vpop.f32.mrb[13].mxu0  ;;  %v581_v51 = vadd.f32 %v1168_v47, %v1710_v1 }
 0x109   : > { %v715_v50 = vadd.f32 %v714_v46, %v684_v45  ;;  %v576_v53 = vadd.f32 %v1710_v1, %v575_v48 }
 0x10a   : > { %v687_v58 = vmax.f32 %v581_v51, 0.0 }
 0x10b   : > { %v686_v54 = vmax.f32 %v576_v53, 0.0  ;;  %v716_v55 = vadd.f32 %v715_v50, %v685_v49  ;;  %v1171_v56 = vpop.f32.mrb[14].mxu0 }
 0x10c   : > { %v585_v57 = vpop.f32.mrb[15].mxu0  ;;  %v591_v60 = vadd.f32 %v1171_v56, %v1710_v1 }
 0x10d   : > { %v717_v59 = vadd.f32 %v716_v55, %v686_v54  ;;  %v586_v61 = vadd.f32 %v1710_v1, %v585_v57 }
 0x10e   : > { %v689_v3 = vmax.f32 %v591_v60, 0.0 }
 0x10f   : > { %v688_v62 = vmax.f32 %v586_v61, 0.0  ;;  %v718_v63 = vadd.f32 %v717_v59, %v687_v58  ;;  %v1174_v0 = vpop.f32.mrb[16].mxu0 }
 0x110   : > { %v595_v2 = vpop.f32.mrb[17].mxu0  ;;  %v601_v5 = vadd.f32 %v1174_v0, %v1710_v1 }
 0x111   : > { %v719_v4 = vadd.f32 %v718_v63, %v688_v62  ;;  %v596_v6 = vadd.f32 %v1710_v1, %v595_v2 }
 0x112   : > { %v691_v11 = vmax.f32 %v601_v5, 0.0 }
 0x113   : > { %v690_v7 = vmax.f32 %v596_v6, 0.0  ;;  %v720_v8 = vadd.f32 %v719_v4, %v689_v3  ;;  %v1177_v9 = vpop.f32.mrb[18].mxu0 }
 0x114   : > { %v605_v10 = vpop.f32.mrb[19].mxu0  ;;  %v611_v13 = vadd.f32 %v1177_v9, %v1710_v1 }
 0x115   : > { %v721_v12 = vadd.f32 %v720_v8, %v690_v7  ;;  %v606_v14 = vadd.f32 %v1710_v1, %v605_v10 }
 0x116   : > { %v693_v19 = vmax.f32 %v611_v13, 0.0 }
 0x117   : > { %v692_v15 = vmax.f32 %v606_v14, 0.0  ;;  %v722_v16 = vadd.f32 %v721_v12, %v691_v11  ;;  %v1180_v17 = vpop.f32.mrb[20].mxu0  ;;  %v748_v12 = vld [vmem:[#allocation2] sm:$0x1] }
 0x118   : > { %v615_v18 = vpop.f32.mrb[21].mxu0  ;;  %v621_v21 = vadd.f32 %v1180_v17, %v1710_v1 }
 0x119   : > { %v723_v20 = vadd.f32 %v722_v16, %v692_v15  ;;  %v616_v22 = vadd.f32 %v1710_v1, %v615_v18  ;;  %v844_v15 = vld [vmem:[%s1864_s5] sm:$0xff] }
 0x11a   : > { %v695_v27 = vmax.f32 %v621_v21, 0.0 }
 0x11b   : > { %v694_v23 = vmax.f32 %v616_v22, 0.0  ;;  %v724_v24 = vadd.f32 %v723_v20, %v693_v19  ;;  %v1183_v25 = vpop.f32.mrb[22].mxu0  ;;  %v846_v19 = vld [vmem:[%s1864_s5 + $0x10] sm:$0xff]  ;;  %v847_v20 = vld [vmem:[%s1864_s5 + $0x18] sm:$0xff]  ;;  %v848_v22 = vld [vmem:[%s1864_s5 + $0x20] sm:$0xff] }
 0x11c   : > { %v625_v26 = vpop.f32.mrb[23].mxu0  ;;  %v631_v29 = vadd.f32 %v1183_v25, %v1710_v1  ;;  %v1302_v21 = vpack.c.bf16 %v847_v20, %v846_v19  ;;  %v850_v25 = vld [vmem:[%s1864_s5 + $0x30] sm:$0xff] }
 0x11d   : > { %v725_v28 = vadd.f32 %v724_v24, %v694_v23  ;;  %v626_v30 = vadd.f32 %v1710_v1, %v625_v26  ;;  %v849_v23 = vld [vmem:[%s1864_s5 + $0x28] sm:$0xff] }
 0x11e   : > { %v697_v35 = vmax.f32 %v631_v29, 0.0  ;;  %v1305_v24 = vpack.c.bf16 %v849_v23, %v848_v22 }
 0x11f   : > { %v696_v31 = vmax.f32 %v626_v30, 0.0  ;;  %v726_v32 = vadd.f32 %v725_v28, %v695_v27  ;;  %v1186_v33 = vpop.f32.mrb[24].mxu0  ;;  %v852_v27 = vld [vmem:[%s1864_s5 + $0x40] sm:$0xff]  ;;  %v853_v28 = vld [vmem:[%s1864_s5 + $0x48] sm:$0xff]  ;;  %v854_v30 = vld [vmem:[%s1864_s5 + $0x50] sm:$0xff] }
 0x120   : > { %v635_v34 = vpop.f32.mrb[25].mxu0  ;;  %v641_v37 = vadd.f32 %v1186_v33, %v1710_v1  ;;  %v1311_v29 = vpack.c.bf16 %v853_v28, %v852_v27  ;;  %v856_v33 = vld [vmem:[%s1864_s5 + $0x60] sm:$0xff] }
 0x121   : > { %v727_v36 = vadd.f32 %v726_v32, %v696_v31  ;;  %v636_v38 = vadd.f32 %v1710_v1, %v635_v34  ;;  %v855_v31 = vld [vmem:[%s1864_s5 + $0x58] sm:$0xff]  ;;  %v857_v34 = vld [vmem:[%s1864_s5 + $0x68] sm:$0xff] }
 0x122   : > { %v699_v44 = vmax.f32 %v641_v37, 0.0  ;;  %v1314_v32 = vpack.c.bf16 %v855_v31, %v854_v30  ;;  %v859_v37 = vld [vmem:[%s1864_s5 + $0x78] sm:$0xff] }
 0x123   : > { %v698_v39 = vmax.f32 %v636_v38, 0.0  ;;  %v728_v40 = vadd.f32 %v727_v36, %v697_v35  ;;  %v1189_v41 = vpop.f32.mrb[26].mxu0  ;;  %v1317_v35 = vpack.c.bf16 %v857_v34, %v856_v33  ;;  %v858_v36 = vld [vmem:[%s1864_s5 + $0x70] sm:$0xff] }
 0x124   : > { %v645_v43 = vpop.f32.mrb[27].mxu0  ;;  %v651_v46 = vadd.f32 %v1189_v41, %v1710_v1  ;;  %v1320_v38 = vpack.c.bf16 %v859_v37, %v858_v36 }
 0x125   : > { %v729_v45 = vadd.f32 %v728_v40, %v698_v39  ;;  %v646_v47 = vadd.f32 %v1710_v1, %v645_v43  ;;  %v772_v39 = vld [vmem:[%s1863_s4] sm:$0x1] }
 0x126   : > { %v701_v53 = vmax.f32 %v651_v46, 0.0 }
 0x127   : > { %v700_v48 = vmax.f32 %v646_v47, 0.0  ;;  %v730_v49 = vadd.f32 %v729_v45, %v699_v44  ;;  %v1192_v50 = vpop.f32.mrb[28].mxu0  ;;  %v860_v44 = vld [vmem:[%s1865_s6] sm:$0x1] }
 0x128   : > { %v655_v51 = vpop.f32.mrb[29].mxu0  ;;  %v661_v55 = vadd.f32 %v1192_v50, %v1710_v1 }
 0x129   : > { %v731_v54 = vadd.f32 %v730_v49, %v700_v48  ;;  %v656_v56 = vadd.f32 %v1710_v1, %v655_v51 }
 0x12a   : > { %v703_v61 = vmax.f32 %v661_v55, 0.0 }
 0x12b   : > { %v702_v57 = vmax.f32 %v656_v56, 0.0  ;;  %v732_v58 = vadd.f32 %v731_v54, %v701_v53  ;;  %v1195_v59 = vpop.f32.mrb[30].mxu0 }
 0x12c   : > { %v665_v60 = vpop.f32.mrb[31].mxu0  ;;  %v671_v63 = vadd.f32 %v1195_v59, %v1710_v1 }
 0x12d   : > { %v733_v62 = vadd.f32 %v732_v58, %v702_v57  ;;  %v666_v0 = vadd.f32 %v1710_v1, %v665_v60  ;;  %v845_v1 = vld [vmem:[%s1864_s5 + $0x8] sm:$0xff] }
 0x12e   : > { %v705_v4 = vmax.f32 %v671_v63, 0.0  ;;  %v1299_v17 = vpack.c.bf16 %v845_v1, %v844_v15 }
 0x12f   : > { %v704_v2 = vmax.f32 %v666_v0, 0.0  ;;  %v734_v3 = vadd.f32 %v733_v62, %v703_v61 }
 0x131   : > { %v735_v5 = vadd.f32 %v734_v3, %v704_v2 }
 0x133   : > { %v736_v6 = vadd.f32 %v735_v5, %v705_v4 }
 0x135   : > { %v737_v7 = vrot.slane %v736_v6, 4 }
 0x137   : > { %v738_v8 = vadd.f32 %v737_v7, %v736_v6 }
 0x139   : > { %v739_v9 = vrot.slane %v738_v8, 2 }
 0x13b   : > { %v740_v10 = vadd.f32 %v739_v9, %v738_v8 }
 0x13d   : > { %v741_v11 = vrot.slane %v740_v10, 1 }
 0x13f   : > { %v742_v13 = vadd.f32 %v741_v11, %v740_v10 }
 0x141   : > { %v749_v14 = vadd.f32 %v748_v12, %v742_v13 }
 0x143   : > { %750 = vst [vmem:[#allocation2] sm:$0x1] %v749_v14 }
 0x14a   : > { %v754_v16 = vld [vmem:[#allocation2] sm:$0x1] }
 0x14b   : > { %v755_v18 = vmul.f32 0.00390625, %v754_v16 }
 0x14d   : > { %1229 = vmatmul.mubr.f32.vlgmr.msra.gmra.mrb[0].mxu1 %v755_v18 }
 0x14e   : > { %1300 = vmatpush3.bf16.msra.mxu1 %v1299_v17  ;;  %1263 = vmatprep.mubr.msk.f32.mxu1 %vm1464_vm2, %v1463_v52  ;;  %v851_v52 = vld [vmem:[%s1864_s5 + $0x38] sm:$0xff] }
 0x14f   : > { %1301 = vmatprep.subr.bf16.mxu1 %v1462_v42  ;;  %v1308_v26 = vpack.c.bf16 %v851_v52, %v850_v25 }
 0x152   : > { %1303 = vmatpush3.bf16.msra.mxu1 %v1302_v21 }
 0x153   : > { %1304 = vmatprep.subr.bf16.mxu1 %v1462_v42 }
 0x156   : > { %1306 = vmatpush3.bf16.msra.mxu1 %v1305_v24 }
 0x157   : > { %1307 = vmatprep.subr.bf16.mxu1 %v1462_v42 }
 0x15a   : > { %1309 = vmatpush3.bf16.msra.mxu1 %v1308_v26 }
 0x15b   : > { %1310 = vmatprep.subr.bf16.mxu1 %v1462_v42 }
 0x15e   : > { %1312 = vmatpush3.bf16.msra.mxu1 %v1311_v29 }
 0x15f   : > { %1313 = vmatprep.subr.bf16.mxu1 %v1462_v42 }
 0x162   : > { %1315 = vmatpush3.bf16.msra.mxu1 %v1314_v32 }
 0x163   : > { %1316 = vmatprep.subr.bf16.mxu1 %v1462_v42 }
 0x166   : > { %1318 = vmatpush3.bf16.msra.mxu1 %v1317_v35 }
 0x167   : > { %1319 = vmatprep.subr.bf16.mxu1 %v1462_v42 }
 0x16a   : > { %1321 = vmatpush3.bf16.msra.mxu1 %v1320_v38 }
 0x220   : > { %v839_v40 = vpop.f32.mrb[0].mxu1 }
 0x221   : > { %v840_v41 = vadd.f32 %v839_v40, %v772_v39  ;;  %v1230_v43 = vpop.f32.mrb[1].mxu1 }
 0x223   : > { %v843_v42 = vmax.f32 %v840_v41, 0.0 }
 0x225   : > { %1264 = vmatmul.mubr.f32.vlgmr.msra.gmra.mrb[2].mxu1 %v843_v42 }
 0x2f8   : > { %v927_v45 = vpop.f32.mrb[2].mxu1 }
 0x2f9   : > { %v928_v46 = vadd.f32 %v927_v45, %v860_v44  ;;  %v1265_v47 = vpop.f32.mrb[3].mxu1 }
 0x2fb   : > { %v931_v48 = vmul.f32 %v928_v46, %v928_v46 }
 0x2fd   : > { %v933_v49 = vsel %vm932_vm3, %v931_v48, 0.0 }
 0x2fe   : > { %934 = vadd.xlane.f32.xlu0 %v933_v49 }
 0x38b   : > { %v935_v50 = vpop.xlane.xlu0 %934 }
 0x38c   : > { %v936_v51 = vmax.f32 %v935_v50, 1e-24 }
 0x38e   : > { %1380 = vrsqrt.f32 %v936_v51 }
 0x398   : > { %v1381_v53 = vpop.eup %1380 }
 0x399   : > { %v938_v54 = vmul.f32 %v1381_v53, %v928_v46 }
 0x39b   : > { %939 = vst [vmem:[%s293_s30] sm:$0x1] %v938_v54 }
 0x39c   : > { %1395 = shalt.err (!%p1392_p5)
}
 0x39d   : > { %s1396_s20 = scalar_lea.hbm %s1812_s15, 16  ;;  %s1400_s23 = scalar_lea.hbm %s1866_s7, 32 }
 0x39e   : > { %p1397_p6 = scmp.ne.s32.totalorder %s1812_s15, %s1396_s20  ;;  %p1401_p10 = scmp.lt.u32.totalorder %s1812_s15, %s1866_s7 }
 0x39f   : > { %p1402_p11 = scmp.lt.u32.totalorder %s1400_s23, %s1396_s20  ;;  %p1404_p13 = scmp.lt.u32.totalorder %s1396_s20, %s1812_s15 }
 0x3a0   : > { %p1398_p7 = pnand %p1397_p6, %p1546_p4 }
 0x3a1   : > { %p1403_p12 = por %p1402_p11, %p1401_p10 }
 0x3a2   : > { %p1399_p9 = pneg %p1398_p7 }
 0x3a3   : > { %p1405_p0 = por %p1404_p13, %p1403_p12 }
 0x3a5   : > { %p1406_p1 = pnand %p1405_p0, %p1399_p9 }
 0x3a7   : > { %1409 = shalt.err (!%p1406_p1)
}
 0x3a8   : > { %1322 = dma.vmem_to_hbm [thread:$0]  (%p1546_p4), %s1814_s8, 16, %s1812_s15, %s941_s16  }
 0x3a9 PF: > { %p1328_p2 = scmp.ge.s32.totalorder %s1460_s29, 2  ;;  %s965_s12 = sand.u32 1, %s1440_s24  }
 0x3aa   : > { %s966_s17 = scalar_lea.sflag [#allocation4], %s965_s12 }
 0x3ab   : > { %p1325_p3 = pnand %p1328_p2, %p1553_p8 }
 0x3ad   : > { %1435 = dma.done.wait (!%p1325_p3), %s966_s17, 16  }
 0x3ae   : > { %1437 = vsyncadd (!%p1325_p3), %s966_s17, 4294967280  ;;  %s20_s29 = sadd.s32 1, %s1460_s29   ;;  %s1869_s24 = smov %s1444_s25 }
 0x3af   : > { %p17_p5 = scmp.ge.s32.totalorder %s20_s29, 4   ;;  %s1870_s25 = smov %s1448_s26 }
 0x3b0   : > { %s1871_s26 = smov %s1559_s14  ;;  %s1872_s27 = smov %s1456_s28 }
 0x3b1   : > { %s1873_s28 = smov %s1875_s9  ;;  %19 = sbr.rel (!%p17_p5) target bundleno = 4 (0x4), region = 91 }
 0x3b8   :  { %970 = vsyncpa [#allocation4], 1 }
 0x3b9   :  { %972 = vsyncpa [#allocation4 + $0x1], 1 }

</bundles_post_ra>
